<compile_context>
chip_gen: v7x
topology: tpu7x:2x2x1
jax: 0.10.0
libtpu: 0.0.40
codegen_flags: <defaults>
</compile_context>

<pallas_src>
import jax
import jax.numpy as jnp
from jax.experimental import pallas as pl
from jax.experimental.pallas import tpu as pltpu


_CANONICAL_ORDER = ("image", "semantic", "cloud", "text")
_LANE = 128       # TPU lane width: chunk minor dims stay multiples of this
_CLOUD_K = 8      # xyz (3) + constant-1 bias row + zero pad -> sublane-aligned K


def _place_cols(mat, col_off, d_total):
    """Place `mat` ([K, d]) at column offset `col_off` of a zero [K, d_total] matrix."""
    out = jnp.zeros((mat.shape[0], d_total), jnp.float32)
    return out.at[:, col_off:col_off + mat.shape[1]].set(mat)


# ---------------------------------------------------------------------------
# One fused kernel: every present branch + Concat fusion in a single pallas_call
# ---------------------------------------------------------------------------
def fused_late_fusion(batch, ordered_modules, *, hw_tile=512):
    """ordered_modules: [(name, branch)] in canonical concat order.

    Returns (fused [B, D_total] float32, {name: column slice of fused}).
    """
    canonical = [name for name, _ in ordered_modules]

    # Column offset of each branch inside the fused descriptor row.
    dims, offs, off = {}, {}, 0
    for name, mod in ordered_modules:
        dims[name] = mod.out_dim
        offs[name] = off
        off += mod.out_dim
    d_total = off

    spatial, token, cloud = [], [], None
    for name, mod in ordered_modules:
        if mod.kind == "spatial_pool":        # GAP over H*W (image / semantic)
            x, n_red = mod.kernel_input(batch)
            spatial.append(dict(name=name, x=x, n=n_red, mod=mod))
        elif mod.kind == "token_pool":        # mean over tokens (text)
            x, n_red = mod.kernel_input(batch)
            token.append(dict(name=name, x=x, n=n_red, mod=mod))
        elif mod.kind == "cloud":             # per-point MLP + max-pool
            cloud = dict(name=name, mod=mod)
        else:
            # TODO(synk): arbitrary user-supplied branch modules are not fused.
            raise NotImplementedError("unsupported branch kind")

    if spatial:
        batch_size = spatial[0]["x"].shape[0]
    elif token:
        batch_size = token[0]["x"].shape[0]
    else:
        batch_size = batch["cloud"].shape[0]

    # ---- grid over the spatial reduce axis (H*W), reduce axis is "arbitrary" ----
    if spatial:
        hw = spatial[0]["n"]
        assert all(s["n"] == hw for s in spatial), "spatial branches must share H*W"
        if hw > hw_tile and hw_tile % _LANE == 0 and hw % hw_tile == 0:
            sp_tile = hw_tile
        else:
            # TODO(synk): mask partial chunks when H*W is not divisible by hw_tile.
            sp_tile = hw
        num_steps = hw // sp_tile
    else:
        sp_tile, num_steps = 0, 1

    have_pool = bool(spatial) or bool(token)
    have_cloud = cloud is not None

    # ---- packed pooled-head weights: one [F_total, D_total] matmul builds the -----
    # ---- fused row directly (each head's columns at its canonical offset).    -----
    b_packed = jnp.zeros((1, d_total), jnp.float32)
    w_rows = []
    for p in spatial + token:
        m, nm = p["mod"], p["name"]
        # fold the 1/N mean into the head weight (every chunk holds real data only)
        w_rows.append(_place_cols(m.w / float(p["n"]), offs[nm], d_total))
        b_packed = b_packed.at[:, offs[nm]:offs[nm] + dims[nm]].set(m.b)
    w_packed = (jnp.concatenate(w_rows, axis=0).astype(jnp.bfloat16)
                if w_rows else None)

    # ---- cloud prep: channel-planar bf16 points + padded / augmented weights ------
    hid = cloud_steps = cloud_tile = 0
    if have_cloud:
        m = cloud["mod"]
        hid = m.w1.shape[1]
        c_off = offs[cloud["name"]]
        n_pts = batch["cloud"].shape[1]
        # channel-planar [B, 8, N] bf16: xyz rows 0..2, row 3 == 1.0 (carries the L1
        # bias through the matmul), rows 4..7 zero -> sublane-aligned K for the MXU.
        # TODO(synk): ideally the dataloader provides channel-planar points already.
        pts = jnp.transpose(batch["cloud"], (0, 2, 1)).astype(jnp.bfloat16)   # [B,3,N]
        pts_planar = jnp.concatenate(
            [pts,
             jnp.ones((batch_size, 1, n_pts), jnp.bfloat16),
             jnp.zeros((batch_size, _CLOUD_K - 4, n_pts), jnp.bfloat16)], axis=1)
        w1t_aug = jnp.zeros((hid, _CLOUD_K), jnp.float32)
        w1t_aug = w1t_aug.at[:, :3].set(m.w1.T)
        w1t_aug = w1t_aug.at[:, 3].set(m.b1[0])        # bias via the constant-1 row
        w1t_aug = w1t_aug.astype(jnp.bfloat16)
        # second layer transposed & column-placed at the cloud offset of the fused row
        w2t_pad = _place_cols(m.w2, c_off, d_total).T.astype(jnp.bfloat16)   # [D_tot, HID]
        # L2 bias is constant across points -> folded into the packed bias row.
        b_packed = b_packed.at[:, c_off:c_off + dims[cloud["name"]]].set(m.b2)
        if num_steps > 1 and n_pts % num_steps == 0 and (n_pts // num_steps) % _LANE == 0:
            cloud_steps = num_steps            # tile points along the same grid axis
        else:
            cloud_steps = 1                    # resident single block, processed once
        cloud_tile = n_pts // cloud_steps

    # ---- assemble pallas_call operands / specs ------------------------------------
    inputs, in_specs = [], []
    for p in spatial:                                               # [B, C, H*W] bf16
        inputs.append(p["x"])
        in_specs.append(pl.BlockSpec((batch_size, p["x"].shape[1], sp_tile),
                                     lambda j: (0, 0, j)))
    for p in token:                                                 # [B, T, E] bf16
        inputs.append(p["x"])
        in_specs.append(pl.BlockSpec(p["x"].shape, lambda j: (0, 0, 0)))
    if have_pool:                                   # weights: constant index maps ->
        inputs.append(w_packed)                     # VMEM-resident across grid steps
        in_specs.append(pl.BlockSpec(w_packed.shape, lambda j: (0, 0)))
    inputs.append(b_packed)
    in_specs.append(pl.BlockSpec(b_packed.shape, lambda j: (0, 0)))
    if have_cloud:
        pts_map = (lambda j: (0, 0, j)) if cloud_steps > 1 else (lambda j: (0, 0, 0))
        inputs += [pts_planar, w1t_aug, w2t_pad]
        in_specs += [pl.BlockSpec((batch_size, _CLOUD_K, cloud_tile), pts_map),
                     pl.BlockSpec(w1t_aug.shape, lambda j: (0, 0)),
                     pl.BlockSpec(w2t_pad.shape, lambda j: (0, 0))]

    scratch_shapes = [pltpu.VMEM((batch_size, p["x"].shape[1]), jnp.float32)
                      for p in spatial]
    if have_cloud:
        scratch_shapes.append(pltpu.VMEM((batch_size, d_total), jnp.float32))

    n_spatial, n_token, n_inputs = len(spatial), len(token), len(inputs)

    def kernel(*refs):
        in_refs = refs[:n_inputs]
        o_ref = refs[n_inputs]
        scratch = refs[n_inputs + 1:]

        idx = 0
        sp_refs = in_refs[idx:idx + n_spatial]; idx += n_spatial
        tok_refs = in_refs[idx:idx + n_token]; idx += n_token
        if have_pool:
            wp_ref = in_refs[idx]; idx += 1
        bp_ref = in_refs[idx]; idx += 1
        if have_cloud:
            pts_ref, w1_ref, w2_ref = in_refs[idx:idx + 3]; idx += 3

        sp_accs = scratch[:n_spatial]
        cloud_acc = scratch[n_spatial] if have_cloud else None

        j = pl.program_id(0)
        last = pl.num_programs(0) - 1

        # -- init resident accumulators on the first grid step ----------------------
        @pl.when(j == 0)
        def _():
            for acc in sp_accs:
                acc[...] = jnp.zeros_like(acc)
            if have_cloud:
                cloud_acc[...] = jnp.full_like(cloud_acc, -jnp.inf)

        # -- spatial pools: accumulate lane-axis partial sums (f32, v5e-safe) -------
        for acc, xr in zip(sp_accs, sp_refs):
            acc[...] += jnp.sum(xr[...].astype(jnp.float32), axis=2)

        # -- cloud: per-point MLP on this point chunk + running max -----------------
        if have_cloud:
            def _cloud_chunk():
                pts_c = pts_ref[...]                                   # [B, 8, n] bf16
                w1 = jnp.broadcast_to(w1_ref[...][None],
                                      (batch_size, hid, _CLOUD_K))
                # K=8 contraction on the (otherwise idle) MXU; bf16 operands, f32 acc;
                # the constant-1 channel adds the L1 bias for free.
                h = jnp.einsum("bhk,bkn->bhn", w1, pts_c,
                               preferred_element_type=jnp.float32)     # [B, HID, n]
                h = jnp.maximum(h, 0.0).astype(jnp.bfloat16)
                w2 = jnp.broadcast_to(w2_ref[...][None],
                                      (batch_size, d_total, hid))
                f = jnp.einsum("bdh,bhn->bdn", w2, h,
                               preferred_element_type=jnp.float32)     # [B, D_tot, n]
                cloud_acc[...] = jnp.maximum(cloud_acc[...], jnp.max(f, axis=2))

            if cloud_steps == num_steps:
                _cloud_chunk()                    # one point chunk per grid step
            else:
                pl.when(j == 0)(_cloud_chunk)     # resident block, processed once

        # -- finalize: packed heads matmul builds the fused row; ONE 128-lane store -
        @pl.when(j == last)
        def _():
            if have_pool:
                pooled_parts = [acc[...] for acc in sp_accs]
                pooled_parts += [jnp.sum(tr[...].astype(jnp.float32), axis=1)
                                 for tr in tok_refs]
                pooled = (pooled_parts[0] if len(pooled_parts) == 1
                          else jnp.concatenate(pooled_parts, axis=1))
                fused = jnp.dot(pooled.astype(jnp.bfloat16), wp_ref[...],
                                preferred_element_type=jnp.float32) + bp_ref[...]
            else:
                fused = jnp.broadcast_to(bp_ref[...], (batch_size, d_total))
            if have_cloud:
                fused = fused + cloud_acc[...]
            o_ref[...] = fused

    fused_out = pl.pallas_call(
        kernel,
        out_shape=jax.ShapeDtypeStruct((batch_size, d_total), jnp.float32),
        grid_spec=pltpu.PrefetchScalarGridSpec(
            num_scalar_prefetch=0,
            grid=(num_steps,),
            in_specs=in_specs,
            out_specs=pl.BlockSpec((batch_size, d_total), lambda j: (0, 0)),
            scratch_shapes=scratch_shapes),
        compiler_params=pltpu.CompilerParams(
            dimension_semantics=("arbitrary",),     # reduce axis with resident scratch
            vmem_limit_bytes=32 * 1024 * 1024),
    )(*inputs)

    col_slices, off = {}, 0
    for name in canonical:
        col_slices[name] = slice(off, off + dims[name])
        off += dims[name]
    return fused_out, col_slices


# ---------------------------------------------------------------------------
# Modality branches (deterministic synthetic weights)
# ---------------------------------------------------------------------------
class ImagePoolBranch:
    """GAP over HxW then linear head. Expects NCHW input under `key_name`."""
    kind = "spatial_pool"

    def __init__(self, rng, in_ch, out_dim, key_name):
        k1, k2 = jax.random.split(rng)
        self.w = 0.05 * jax.random.normal(k1, (in_ch, out_dim), jnp.float32)
        self.b = 0.05 * jax.random.normal(k2, (1, out_dim), jnp.float32)
        self.key_name = key_name
        self.out_dim = out_dim

    def kernel_input(self, batch):
        x = batch[self.key_name]                      # [B, C, H, W] (NCHW)
        b, c, h, w = x.shape
        # channels on sublanes, H*W on the 128-lane axis: free reshape, lane-dense DMA.
        return x.reshape(b, c, h * w), h * w

    def __call__(self, batch):
        fused, _ = fused_late_fusion(batch, [(self.key_name, self)])
        return {"final_descriptor": fused}


class TextBranch:
    """Mean-pool over tokens then linear head."""
    kind = "token_pool"

    def __init__(self, rng, emb_dim, out_dim):
        k1, k2 = jax.random.split(rng)
        self.w = 0.05 * jax.random.normal(k1, (emb_dim, out_dim), jnp.float32)
        self.b = 0.05 * jax.random.normal(k2, (1, out_dim), jnp.float32)
        self.out_dim = out_dim

    def kernel_input(self, batch):
        t = batch["text"]                             # [B, T, E]
        return t, t.shape[1]

    def __call__(self, batch):
        fused, _ = fused_late_fusion(batch, [("text", self)])
        return {"final_descriptor": fused}


class CloudBranch:
    """Per-point MLP + max-pool (PointNet-lite)."""
    kind = "cloud"

    def __init__(self, rng, in_ch, hidden, out_dim):
        assert in_ch == 3, "PointNet-lite branch expects xyz points"
        k1, k2, k3, k4 = jax.random.split(rng, 4)
        self.w1 = 0.05 * jax.random.normal(k1, (in_ch, hidden), jnp.float32)
        self.b1 = 0.05 * jax.random.normal(k2, (1, hidden), jnp.float32)
        self.w2 = 0.05 * jax.random.normal(k3, (hidden, out_dim), jnp.float32)
        self.b2 = 0.05 * jax.random.normal(k4, (1, out_dim), jnp.float32)
        self.out_dim = out_dim

    def __call__(self, batch):
        fused, _ = fused_late_fusion(batch, [("cloud", self)])
        return {"final_descriptor": fused}


class Concat:
    """Default fusion module: concatenate modality descriptors along dim=1."""
    _ORDER = _CANONICAL_ORDER

    def __call__(self, data):
        return jnp.concatenate([data[k] for k in self._ORDER if k in data], axis=1)


# ---------------------------------------------------------------------------
# LateFusionModel — mirrors the PyTorch forward
# ---------------------------------------------------------------------------
class LateFusionModel:
    def __init__(self, image_module=None, semantic_module=None, cloud_module=None,
                 text_module=None, fusion_module=None, hw_tile=512):
        self.image_module = image_module
        self.semantic_module = semantic_module
        self.cloud_module = cloud_module
        self.text_module = text_module
        self.fusion_module = fusion_module if fusion_module else Concat()
        self.hw_tile = hw_tile        # spatial reduce-axis chunk (halve on v7x)

    def forward(self, batch):
        modules = {
            "image": self.image_module,
            "semantic": self.semantic_module,
            "cloud": self.cloud_module,
            "text": self.text_module,
        }
        present = [(n, modules[n]) for n in _CANONICAL_ORDER if modules[n] is not None]
        # All present branches + Concat fusion execute in a single pallas_call;
        # per-modality descriptors are column slices of the fused output.
        fused, col_slices = fused_late_fusion(batch, present, hw_tile=self.hw_tile)
        out_dict = {name: fused[:, sl] for name, sl in col_slices.items()}
        if isinstance(self.fusion_module, Concat):
            out_dict["final_descriptor"] = fused       # already the Concat result
        else:
            # TODO(synk): custom fusion modules run outside the fused Pallas kernel.
            out_dict["final_descriptor"] = self.fusion_module(out_dict)
        return out_dict

    __call__ = forward


# ---------------------------------------------------------------------------
# Pure-JAX f32 reference for correctness checking
# ---------------------------------------------------------------------------
def _reference(model, batch):
    f = {k: v.astype(jnp.float32) for k, v in batch.items()}
    im, se = model.image_module, model.semantic_module
    cb, tx = model.cloud_module, model.text_module
    img = jnp.mean(f["image"], axis=(2, 3)) @ im.w + im.b
    sem = jnp.mean(f["semantic"], axis=(2, 3)) @ se.w + se.b
    h = jnp.maximum(jnp.einsum("bnc,ch->bnh", f["cloud"], cb.w1) + cb.b1, 0.0)
    cld = jnp.max(jnp.einsum("bnh,hd->bnd", h, cb.w2) + cb.b2, axis=1)
    txt = jnp.mean(f["text"], axis=1) @ tx.w + tx.b
    return jnp.concatenate([img, sem, cld, txt], axis=1)


if __name__ == "__main__":
    B = 2
    C_IMG, C_SEM, H, W = 4, 6, 16, 16
    N_PTS, C_PTS, HID = 128, 3, 32
    T_TOK, E_TXT = 8, 32
    D_DESC = 32

    root = jax.random.PRNGKey(0)
    k_img, k_sem, k_cld, k_txt, k_data = jax.random.split(root, 5)

    model = LateFusionModel(
        image_module=ImagePoolBranch(k_img, C_IMG, D_DESC, "image"),
        semantic_module=ImagePoolBranch(k_sem, C_SEM, D_DESC, "semantic"),
        cloud_module=CloudBranch(k_cld, C_PTS, HID, D_DESC),
        text_module=TextBranch(k_txt, E_TXT, D_DESC),
        # hw_tile=128 exercises the 2-step reduce-axis grid at the toy H*W=256;
        # use 512-1024 at realistic sizes (and roughly half of that on v7x).
        hw_tile=128,
    )

    d1, d2, d3, d4 = jax.random.split(k_data, 4)
    # bf16 activations from HBM (halves DMA bytes); the kernel upcasts to f32 to pool.
    batch = {
        "image": jax.random.normal(d1, (B, C_IMG, H, W), jnp.float32).astype(jnp.bfloat16),
        "semantic": jax.random.normal(d2, (B, C_SEM, H, W), jnp.float32).astype(jnp.bfloat16),
        "cloud": jax.random.normal(d3, (B, N_PTS, C_PTS), jnp.float32).astype(jnp.bfloat16),
        "text": jax.random.normal(d4, (B, T_TOK, E_TXT), jnp.float32).astype(jnp.bfloat16),
    }

    out = model(batch)
    final = jax.block_until_ready(out["final_descriptor"])
    assert final.shape == (B, 4 * D_DESC), final.shape
    for k in ("image", "semantic", "cloud", "text"):
        assert out[k].shape == (B, D_DESC), (k, out[k].shape)

    ref = _reference(model, batch)
    # bf16 MXU operands / bf16-quantised weights vs the f32-weight reference.
    assert jnp.allclose(final, ref, rtol=2e-2, atol=2e-2), "mismatch vs reference"

    print("KERNEL_OK")
</pallas_src>

<mosaic_0001>
module attributes {stable_mosaic.version = 11 : i64} {
  func.func @kernel(%arg0: i32, %arg1: memref<2x4x128xbf16, #tpu.memory_space<vmem>>, %arg2: memref<2x6x128xbf16, #tpu.memory_space<vmem>>, %arg3: memref<2x8x32xbf16, #tpu.memory_space<vmem>>, %arg4: memref<42x128xbf16, #tpu.memory_space<vmem>>, %arg5: memref<1x128xf32, #tpu.memory_space<vmem>>, %arg6: memref<2x8x128xbf16, #tpu.memory_space<vmem>>, %arg7: memref<32x8xbf16, #tpu.memory_space<vmem>>, %arg8: memref<128x32xbf16, #tpu.memory_space<vmem>>, %arg9: memref<2x128xf32, #tpu.memory_space<vmem>>, %arg10: memref<2x4xf32, #tpu.memory_space<vmem>>, %arg11: memref<2x6xf32, #tpu.memory_space<vmem>>, %arg12: memref<2x128xf32, #tpu.memory_space<vmem>>) attributes {dimension_semantics = [#tpu.dimension_semantics<arbitrary>], iteration_bounds = array<i64: 2>, scalar_prefetch = 0 : i64, scratch_operands = 3 : i64, tpu.core_type = #tpu.core_type<tc>, window_params = [{transform_indices = @transform_0, window_bounds = array<i64: 2, 4, 128>}, {transform_indices = @transform_1, window_bounds = array<i64: 2, 6, 128>}, {pipeline_mode = #tpu.pipeline_mode<synchronous>, transform_indices = @transform_2, window_bounds = array<i64: 2, 8, 32>}, {pipeline_mode = #tpu.pipeline_mode<synchronous>, transform_indices = @transform_3, window_bounds = array<i64: 42, 128>}, {pipeline_mode = #tpu.pipeline_mode<synchronous>, transform_indices = @transform_4, window_bounds = array<i64: 1, 128>}, {pipeline_mode = #tpu.pipeline_mode<synchronous>, transform_indices = @transform_5, window_bounds = array<i64: 2, 8, 128>}, {pipeline_mode = #tpu.pipeline_mode<synchronous>, transform_indices = @transform_6, window_bounds = array<i64: 32, 8>}, {pipeline_mode = #tpu.pipeline_mode<synchronous>, transform_indices = @transform_7, window_bounds = array<i64: 128, 32>}, {pipeline_mode = #tpu.pipeline_mode<synchronous>, transform_indices = @transform_8, window_bounds = array<i64: 2, 128>}]} {
    %c0_i32 = arith.constant 0 : i32
    %0 = arith.cmpi eq, %arg0, %c0_i32 : i32
    %1 = arith.extui %0 : i1 to i32
    %c0_i32_0 = arith.constant 0 : i32
    %2 = arith.cmpi ne, %1, %c0_i32_0 : i32
    scf.if %2 {
      %cst_18 = arith.constant 0.000000e+00 : f32
      %21 = vector.broadcast %cst_18 : f32 to vector<2x4xf32>
      %c0_19 = arith.constant 0 : index
      %c0_20 = arith.constant 0 : index
      %22 = vector.load %arg10[%c0_19, %c0_20] : memref<2x4xf32, #tpu.memory_space<vmem>>, vector<2x4xf32>
      tpu.vector_store %arg10[%c0_19, %c0_20], %21 {strides = array<i32>} : memref<2x4xf32, #tpu.memory_space<vmem>>, vector<2x4xf32>,
      %cst_21 = arith.constant 0.000000e+00 : f32
      %23 = vector.broadcast %cst_21 : f32 to vector<2x6xf32>
      %c0_22 = arith.constant 0 : index
      %c0_23 = arith.constant 0 : index
      %24 = vector.load %arg11[%c0_22, %c0_23] : memref<2x6xf32, #tpu.memory_space<vmem>>, vector<2x6xf32>
      tpu.vector_store %arg11[%c0_22, %c0_23], %23 {strides = array<i32>} : memref<2x6xf32, #tpu.memory_space<vmem>>, vector<2x6xf32>,
      %cst_24 = arith.constant 0xFF800000 : f32
      %25 = vector.broadcast %cst_24 : f32 to vector<2x128xf32>
      %c0_25 = arith.constant 0 : index
      %c0_26 = arith.constant 0 : index
      %26 = vector.load %arg12[%c0_25, %c0_26] : memref<2x128xf32, #tpu.memory_space<vmem>>, vector<2x128xf32>
      tpu.vector_store %arg12[%c0_25, %c0_26], %25 {strides = array<i32>} : memref<2x128xf32, #tpu.memory_space<vmem>>, vector<2x128xf32>,
    } else {
    }
    %c0 = arith.constant 0 : index
    %c0_1 = arith.constant 0 : index
    %3 = vector.load %arg10[%c0, %c0_1] : memref<2x4xf32, #tpu.memory_space<vmem>>, vector<2x4xf32>
    %c0_2 = arith.constant 0 : index
    %c0_3 = arith.constant 0 : index
    %c0_4 = arith.constant 0 : index
    %4 = vector.load %arg1[%c0_2, %c0_3, %c0_4] : memref<2x4x128xbf16, #tpu.memory_space<vmem>>, vector<2x4x128xbf16>
    %5 = arith.extf %4 : vector<2x4x128xbf16> to vector<2x4x128xf32>
    %cst = arith.constant dense<0.000000e+00> : vector<2x4xf32>
    %6 = vector.multi_reduction <add>, %5, %cst [2] : vector<2x4x128xf32> to vector<2x4xf32>
    %7 = arith.addf %3, %6 : vector<2x4xf32>
    %c0_5 = arith.constant 0 : index
    %c0_6 = arith.constant 0 : index
    %8 = vector.load %arg10[%c0_5, %c0_6] : memref<2x4xf32, #tpu.memory_space<vmem>>, vector<2x4xf32>
    tpu.vector_store %arg10[%c0_5, %c0_6], %7 {strides = array<i32>} : memref<2x4xf32, #tpu.memory_space<vmem>>, vector<2x4xf32>,
    %c0_7 = arith.constant 0 : index
    %c0_8 = arith.constant 0 : index
    %9 = vector.load %arg11[%c0_7, %c0_8] : memref<2x6xf32, #tpu.memory_space<vmem>>, vector<2x6xf32>
    %c0_9 = arith.constant 0 : index
    %c0_10 = arith.constant 0 : index
    %c0_11 = arith.constant 0 : index
    %10 = vector.load %arg2[%c0_9, %c0_10, %c0_11] : memref<2x6x128xbf16, #tpu.memory_space<vmem>>, vector<2x6x128xbf16>
    %11 = arith.extf %10 : vector<2x6x128xbf16> to vector<2x6x128xf32>
    %cst_12 = arith.constant dense<0.000000e+00> : vector<2x6xf32>
    %12 = vector.multi_reduction <add>, %11, %cst_12 [2] : vector<2x6x128xf32> to vector<2x6xf32>
    %13 = arith.addf %9, %12 : vector<2x6xf32>
    %c0_13 = arith.constant 0 : index
    %c0_14 = arith.constant 0 : index
    %14 = vector.load %arg11[%c0_13, %c0_14] : memref<2x6xf32, #tpu.memory_space<vmem>>, vector<2x6xf32>
    tpu.vector_store %arg11[%c0_13, %c0_14], %13 {strides = array<i32>} : memref<2x6xf32, #tpu.memory_space<vmem>>, vector<2x6xf32>,
    %c0_i32_15 = arith.constant 0 : i32
    %15 = arith.cmpi eq, %arg0, %c0_i32_15 : i32
    %16 = arith.extui %15 : i1 to i32
    %c0_i32_16 = arith.constant 0 : i32
    %17 = arith.cmpi ne, %16, %c0_i32_16 : i32
    scf.if %17 {
      %c0_18 = arith.constant 0 : index
      %c0_19 = arith.constant 0 : index
      %c0_20 = arith.constant 0 : index
      %21 = vector.load %arg6[%c0_18, %c0_19, %c0_20] : memref<2x8x128xbf16, #tpu.memory_space<vmem>>, vector<2x8x128xbf16>
      %c0_21 = arith.constant 0 : index
      %c0_22 = arith.constant 0 : index
      %22 = vector.load %arg7[%c0_21, %c0_22] : memref<32x8xbf16, #tpu.memory_space<vmem>>, vector<32x8xbf16>
      %23 = vector.shape_cast %22 : vector<32x8xbf16> to vector<1x32x8xbf16>
      %24 = vector.shape_cast %23 : vector<1x32x8xbf16> to vector<1x32x8xbf16>
      %25 = vector.broadcast %24 : vector<1x32x8xbf16> to vector<2x32x8xbf16>
      "tpu.trace_start"() <{level = 10 : i32, message = "bhk,bkn->bhn"}> : () -> ()
      %cst_23 = arith.constant dense<0.000000e+00> : vector<2x32x128xf32>
      %26 = tpu.matmul %25, %21, %cst_23 {dimension_numbers = #tpu.dot_dimension_numbers<[2], [1], [1], [2], [0, 0, 0, 1, 1, 2], [0], [0]>} : vector<2x32x8xbf16>, vector<2x8x128xbf16>, vector<2x32x128xf32> -> vector<2x32x128xf32>
      "tpu.trace_stop"() : () -> ()
      %cst_24 = arith.constant 0.000000e+00 : f32
      %27 = vector.broadcast %cst_24 : f32 to vector<2x32x128xf32>
      %28 = arith.maximumf %26, %27 : vector<2x32x128xf32>
      %29 = arith.truncf %28 : vector<2x32x128xf32> to vector<2x32x128xbf16>
      %c0_25 = arith.constant 0 : index
      %c0_26 = arith.constant 0 : index
      %30 = vector.load %arg8[%c0_25, %c0_26] : memref<128x32xbf16, #tpu.memory_space<vmem>>, vector<128x32xbf16>
      %31 = vector.shape_cast %30 : vector<128x32xbf16> to vector<1x128x32xbf16>
      %32 = vector.shape_cast %31 : vector<1x128x32xbf16> to vector<1x128x32xbf16>
      %33 = vector.broadcast %32 : vector<1x128x32xbf16> to vector<2x128x32xbf16>
      "tpu.trace_start"() <{level = 10 : i32, message = "bdh,bhn->bdn"}> : () -> ()
      %cst_27 = arith.constant dense<0.000000e+00> : vector<2x128x128xf32>
      %34 = tpu.matmul %33, %29, %cst_27 {dimension_numbers = #tpu.dot_dimension_numbers<[2], [1], [1], [2], [0, 0, 0, 1, 1, 2], [0], [0]>} : vector<2x128x32xbf16>, vector<2x32x128xbf16>, vector<2x128x128xf32> -> vector<2x128x128xf32>
      "tpu.trace_stop"() : () -> ()
      %c0_28 = arith.constant 0 : index
      %c0_29 = arith.constant 0 : index
      %35 = vector.load %arg12[%c0_28, %c0_29] : memref<2x128xf32, #tpu.memory_space<vmem>>, vector<2x128xf32>
      %cst_30 = arith.constant dense<0xFF800000> : vector<2x128xf32>
      %36 = vector.multi_reduction <maximumf>, %34, %cst_30 [2] : vector<2x128x128xf32> to vector<2x128xf32>
      %37 = arith.maximumf %35, %36 : vector<2x128xf32>
      %c0_31 = arith.constant 0 : index
      %c0_32 = arith.constant 0 : index
      %38 = vector.load %arg12[%c0_31, %c0_32] : memref<2x128xf32, #tpu.memory_space<vmem>>, vector<2x128xf32>
      tpu.vector_store %arg12[%c0_31, %c0_32], %37 {strides = array<i32>} : memref<2x128xf32, #tpu.memory_space<vmem>>, vector<2x128xf32>,
    } else {
    }
    %c1_i32 = arith.constant 1 : i32
    %18 = arith.cmpi eq, %arg0, %c1_i32 : i32
    %19 = arith.extui %18 : i1 to i32
    %c0_i32_17 = arith.constant 0 : i32
    %20 = arith.cmpi ne, %19, %c0_i32_17 : i32
    scf.if %20 {
      %c0_18 = arith.constant 0 : index
      %c0_19 = arith.constant 0 : index
      %21 = vector.load %arg10[%c0_18, %c0_19] : memref<2x4xf32, #tpu.memory_space<vmem>>, vector<2x4xf32>
      %c0_20 = arith.constant 0 : index
      %c0_21 = arith.constant 0 : index
      %22 = vector.load %arg11[%c0_20, %c0_21] : memref<2x6xf32, #tpu.memory_space<vmem>>, vector<2x6xf32>
      %c0_22 = arith.constant 0 : index
      %c0_23 = arith.constant 0 : index
      %c0_24 = arith.constant 0 : index
      %23 = vector.load %arg3[%c0_22, %c0_23, %c0_24] : memref<2x8x32xbf16, #tpu.memory_space<vmem>>, vector<2x8x32xbf16>
      %24 = arith.extf %23 : vector<2x8x32xbf16> to vector<2x8x32xf32>
      %cst_25 = arith.constant dense<0.000000e+00> : vector<2x32xf32>
      %25 = vector.multi_reduction <add>, %24, %cst_25 [1] : vector<2x8x32xf32> to vector<2x32xf32>
      %26 = tpu.concatenate %21, %22, %25 in 1 : vector<2x4xf32>, vector<2x6xf32>, vector<2x32xf32> -> vector<2x42xf32>
      %27 = arith.truncf %26 : vector<2x42xf32> to vector<2x42xbf16>
      %c0_26 = arith.constant 0 : index
      %c0_27 = arith.constant 0 : index
      %28 = vector.load %arg4[%c0_26, %c0_27] : memref<42x128xbf16, #tpu.memory_space<vmem>>, vector<42x128xbf16>
      %cst_28 = arith.constant dense<0.000000e+00> : vector<2x128xf32>
      %29 = tpu.matmul %27, %28, %cst_28 {dimension_numbers = #tpu.dot_dimension_numbers<[1], [0], [0], [1], [0, 0, 1, 1], [], []>} : vector<2x42xbf16>, vector<42x128xbf16>, vector<2x128xf32> -> vector<2x128xf32>
      %c0_29 = arith.constant 0 : index
      %c0_30 = arith.constant 0 : index
      %30 = vector.load %arg5[%c0_29, %c0_30] : memref<1x128xf32, #tpu.memory_space<vmem>>, vector<1x128xf32>
      %31 = vector.broadcast %30 : vector<1x128xf32> to vector<2x128xf32>
      %32 = arith.addf %29, %31 : vector<2x128xf32>
      %c0_31 = arith.constant 0 : index
      %c0_32 = arith.constant 0 : index
      %33 = vector.load %arg12[%c0_31, %c0_32] : memref<2x128xf32, #tpu.memory_space<vmem>>, vector<2x128xf32>
      %34 = arith.addf %32, %33 : vector<2x128xf32>
      %c0_33 = arith.constant 0 : index
      %c0_34 = arith.constant 0 : index
      %35 = vector.load %arg9[%c0_33, %c0_34] : memref<2x128xf32, #tpu.memory_space<vmem>>, vector<2x128xf32>
      tpu.vector_store %arg9[%c0_33, %c0_34], %34 {strides = array<i32>} : memref<2x128xf32, #tpu.memory_space<vmem>>, vector<2x128xf32>,
    } else {
    }
    return
  }
  func.func @transform_0(%arg0: i32) -> (i32, i32, i32) {
    %c0_i32 = arith.constant 0 : i32
    %c0_i32_0 = arith.constant 0 : i32
    %c0_i32_1 = arith.constant 0 : i32
    return %c0_i32, %c0_i32_0, %arg0 : i32, i32, i32
  }
  func.func @transform_1(%arg0: i32) -> (i32, i32, i32) {
    %c0_i32 = arith.constant 0 : i32
    %c0_i32_0 = arith.constant 0 : i32
    %c0_i32_1 = arith.constant 0 : i32
    return %c0_i32, %c0_i32_0, %arg0 : i32, i32, i32
  }
  func.func @transform_2(%arg0: i32) -> (i32, i32, i32) {
    %c0_i32 = arith.constant 0 : i32
    %c0_i32_0 = arith.constant 0 : i32
    %c0_i32_1 = arith.constant 0 : i32
    %c0_i32_2 = arith.constant 0 : i32
    return %c0_i32, %c0_i32_0, %c0_i32_1 : i32, i32, i32
  }
  func.func @transform_3(%arg0: i32) -> (i32, i32) {
    %c0_i32 = arith.constant 0 : i32
    %c0_i32_0 = arith.constant 0 : i32
    %c0_i32_1 = arith.constant 0 : i32
    return %c0_i32, %c0_i32_0 : i32, i32
  }
  func.func @transform_4(%arg0: i32) -> (i32, i32) {
    %c0_i32 = arith.constant 0 : i32
    %c0_i32_0 = arith.constant 0 : i32
    %c0_i32_1 = arith.constant 0 : i32
    return %c0_i32, %c0_i32_0 : i32, i32
  }
  func.func @transform_5(%arg0: i32) -> (i32, i32, i32) {
    %c0_i32 = arith.constant 0 : i32
    %c0_i32_0 = arith.constant 0 : i32
    %c0_i32_1 = arith.constant 0 : i32
    %c0_i32_2 = arith.constant 0 : i32
    return %c0_i32, %c0_i32_0, %c0_i32_1 : i32, i32, i32
  }
  func.func @transform_6(%arg0: i32) -> (i32, i32) {
    %c0_i32 = arith.constant 0 : i32
    %c0_i32_0 = arith.constant 0 : i32
    %c0_i32_1 = arith.constant 0 : i32
    return %c0_i32, %c0_i32_0 : i32, i32
  }
  func.func @transform_7(%arg0: i32) -> (i32, i32) {
    %c0_i32 = arith.constant 0 : i32
    %c0_i32_0 = arith.constant 0 : i32
    %c0_i32_1 = arith.constant 0 : i32
    return %c0_i32, %c0_i32_0 : i32, i32
  }
  func.func @transform_8(%arg0: i32) -> (i32, i32) {
    %c0_i32 = arith.constant 0 : i32
    %c0_i32_0 = arith.constant 0 : i32
    %c0_i32_1 = arith.constant 0 : i32
    return %c0_i32, %c0_i32_0 : i32, i32
  }
}

</mosaic_0001>

<bundles_post_ra>
// kernel: tpu_custom_call.1
= control target key start
LH: loop header
LB: loop body
LE: loop exit
PB: predicated region body
PF: predicated region fallthrough
CT: control target
= control target key end

     0   :  { %13 = vsyncpa [#allocation8], 0  ;;  %s1664_s27 = smov 0   ;;  %s1666_s28 = smov 0   ;;  %s1908_s0 = inlined_call_operand.vmem [shape: bf16[2,4,256], index: 0, kind: input, shape index: {}]   ;;  %s1909_s1 = inlined_call_operand.vmem [shape: bf16[2,6,256], index: 1, kind: input, shape index: {}]   ;;  %s1910_s2 = inlined_call_operand.vmem [shape: bf16[2,8,32], index: 2, kind: input, shape index: {}]   ;;  %s1911_s3 = inlined_call_operand.vmem [shape: bf16[42,128], index: 3, kind: input, shape index: {}]   ;;  %s1912_s4 = inlined_call_operand.vmem [shape: f32[1,128], index: 4, kind: input, shape index: {}]   ;;  %s1913_s5 = inlined_call_operand.vmem [shape: bf16[2,8,128], index: 5, kind: input, shape index: {}]   ;;  %s1914_s6 = inlined_call_operand.vmem [shape: bf16[32,8], index: 6, kind: input, shape index: {}]   ;;  %s1915_s7 = inlined_call_operand.vmem [shape: bf16[128,32], index: 7, kind: input, shape index: {}]   ;;  %s1916_s8 = inlined_call_operand.hbm [shape: f32[2,128], index: 8, kind: output, shape index: {}]  }
   0x1   :  { %s1668_s29 = smov 0  }
   0x2 LB: > { %s1680_s30 = sadd.s32 4294967295, %s1610_s29   ;;  %s1683_s9 = sadd.s32 1, %s1610_s29   ;;  %s1610_s29 = sphi %s1668_s29, %s1920_s29   ;;  %s1606_s28 = sphi %s1666_s28, %s1919_s28   ;;  %s1602_s27 = sphi %s1664_s27, %s1918_s27  }
   0x3   : > { %s23_s10 = ssub.s32 %s1610_s29, %s1683_s9  ;;  %s26_s11 = sadd.s32 1, %s1606_s28 }
   0x4   : > { %p24_p0 = scmp.eq.s32.totalorder %s23_s10, 0  ;;  %p33_p1 = scmp.ne.s32.totalorder %s1606_s28, %s1602_s27 }
   0x5   : > { %p34_p2 = scmp.eq.s32.totalorder %s1610_s29, 0  ;;  %p1360_p4 = scmp.ge.s32.totalorder %s1610_s29, 2 }
   0x6   : > { %s1692_s12 = scalar_select %p24_p0, %s1606_s28, %s26_s11  }
   0x7   : > { %p1694_p3 = por %p34_p2, %p33_p1  ;;  %250 = sbr.rel (%p1360_p4) target bundleno = 28 (0x1c), region = 40 }
   0xe   : > { %253 = sbr.rel (!%p1694_p3) target bundleno = 21 (0x15), region = 44  ;;  %s255_s14 = sand.u32 (%p1694_p3), 1, %s1606_s28  }
   0xf   : > { %s1362_s15 = sshll.u32 (%p1694_p3), %s1610_s29, 1  ;;  %s1361_s16 = sshll.u32 (%p1694_p3), %s255_s14, 2 }
  0x10   : > { %s259_s19 = scalar_lea.vmem (%p1694_p3), %s1908_s0, %s1362_s15  ;;  %s257_s20 = scalar_lea.vmem (%p1694_p3), [#allocation5], %s1361_s16 }
  0x11   : > { %v275_v0 = vld [vmem:[%s259_s19] sm:$0x3] (%p1694_p3)  ;;  %v277_v1 = vld [vmem:[%s259_s19 + $0x4] sm:$0x3] (%p1694_p3) }
  0x12   : > { %276 = vst [vmem:[%s257_s20] sm:$0x3] (%p1694_p3), %v275_v0  ;;  %278 = vst [vmem:[%s257_s20 + $0x2] sm:$0x3] (%p1694_p3), %v277_v1 }
  0x15 PF: > { %297 = sbr.rel (!%p1694_p3) target bundleno = 28 (0x1c), region = 78  ;;  %s299_s21 = sand.u32 (%p1694_p3), 1, %s1606_s28  }
  0x16   : > { %s1364_s22 = sshll.u32 (%p1694_p3), %s1610_s29, 2  ;;  %s1363_s23 = sshll.u32 (%p1694_p3), %s299_s21, 3 }
  0x17   : > { %s303_s26 = scalar_lea.vmem (%p1694_p3), %s1909_s1, %s1364_s22  ;;  %s301_s10 = scalar_lea.vmem (%p1694_p3), [#allocation6], %s1363_s23 }
  0x18   : > { %v319_v2 = vld [vmem:[%s303_s26] sm:$0xf] (%p1694_p3)  ;;  %v321_v3 = vld [vmem:[%s303_s26 + $0x8] sm:$0xf] (%p1694_p3) }
  0x19   : > { %320 = vst [vmem:[%s301_s10] sm:$0xf] (%p1694_p3), %v319_v2  ;;  %322 = vst [vmem:[%s301_s10 + $0x4] sm:$0xf] (%p1694_p3), %v321_v3 }
  0x1c PF: > { %p1365_p5 = scmp.ge.s32.totalorder %s1610_s29, 1  ;;  %p348_p6 = scmp.lt.s32.totalorder %s1610_s29, 3 }
  0x1e   : > { %p349_p7 = pnand %p1365_p5, %p348_p6 }
  0x1f   : > { %s355_s11 = sand.u32 (!%p349_p7), 1, %s1602_s27   ;;  %p1368_p8 = scmp.ne.s32.totalorder (!%p349_p7), %s1680_s30, 0 }
  0x20   : > { %352 = sbr.rel (%p349_p7) target bundleno = 1081 (0x439), region = 119  ;;  %s1366_s13 = sshll.u32 (!%p349_p7), %s355_s11, 2 }
  0x21   : > { %s1367_s14 = sshll.u32 (!%p349_p7), %s355_s11, 3  ;;  %s357_s15 = scalar_lea.vmem (!%p349_p7), [#allocation5], %s1366_s13 }
  0x22   : > { %s364_s16 = scalar_lea.vmem (!%p349_p7), [#allocation6], %s1367_s14 }
  0x27   : > { %398 = sbr.rel (%p1368_p8) target bundleno = 46 (0x2e), region = 131  ;;  %vm399_vm0 = vcmask (!%p1368_p8), 25600   ;;  %vm401_vm1 = vcmask (!%p1368_p8), 41984   ;;  %v1612_v4 = vmov (!%p1368_p8), 0.0   ;;  %v1613_v5 = vmov (!%p1368_p8), -inf  }
  0x28   : > { %400 = vst.msk [vmem:[#allocation2] sm:$0x3] (!%p1368_p8), %vm399_vm0, %v1612_v4  ;;  %403 = vst [vmem:[#allocation4] sm:$0x3] (!%p1368_p8), %v1613_v5 }
  0x29   : > { %402 = vst.msk [vmem:[#allocation3] sm:$0x3] (!%p1368_p8), %vm401_vm1, %v1612_v4 }
  0x2e PF: > { %v435_v6 = vld [vmem:[%s364_s16] sm:$0x7]  ;;  %vm439_vm2 = vcmask 1045504   ;;  %v405_v7 = vld [vmem:[%s357_s15] sm:$0x3]  ;;  %vm409_vm3 = vcmask 1043456   ;;  %v418_v18 = vlaneseq }
  0x2f   : > { %v437_v8 = vunpack.c.l.bf16 %v435_v6  ;;  %v407_v9 = vunpack.c.l.bf16 %v405_v7  ;;  %v436_v10 = vld [vmem:[%s364_s16 + $0x4] sm:$0x7]  ;;  %v406_v11 = vld [vmem:[%s357_s15 + $0x2] sm:$0x3]  ;;  %vm428_vm4 = vcmask 1041409   ;;  %vm459_vm5 = vcmask 41984  }
  0x30   : > { %v438_v12 = vunpack.c.l.bf16 %v436_v10  ;;  %v408_v13 = vunpack.c.l.bf16 %v406_v11  ;;  %v1721_v19 = vand.u32 127, %v418_v18  ;;  %v1723_v20 = vshrl.u32 %v418_v18, 7  ;;  %v434_v28 = vld [vmem:[#allocation3] sm:$0x3]  ;;  %v404_v30 = vld [vmem:[#allocation2] sm:$0x3] }
  0x31   : > { %v440_v14 = vsel %vm439_vm2, %v437_v8, 0.0  ;;  %v410_v15 = vsel %vm409_vm3, %v407_v9, 0.0  ;;  %vm432_vm6 = vcmask 25600   ;;  %v464_v36 = vld [vmem:[%s1913_s5] sm:$0xf] (!%p1368_p8)  ;;  %vm480_vm7 = vcmask (!%p1368_p8), 64512  }
  0x32   : > { %441 = vadd.xlane.f32.xlu1 %v440_v14  ;;  %411 = vadd.xlane.f32.xlu0 %v410_v15  ;;  %v443_v16 = vsel %vm439_vm2, %v438_v12, 0.0  ;;  %v413_v17 = vsel %vm409_vm3, %v408_v13, 0.0  ;;  %v1727_v23 = vsub.s32 %v1721_v19, %v1723_v20  ;;  %v465_v37 = vld [vmem:[%s1913_s5 + $0x4] sm:$0xf] (!%p1368_p8)  ;;  %v488_v38 = vsel (!%p1368_p8), %vm409_vm3, %v464_v36, 0  ;;  %v1546_v41 = vld [vmem:[%s1914_s6 + $0x8] sm:$0xff] (!%p1368_p8)  }
  0x33   : > { %1506 = vmatprep.subr.msk.bf16.mxu0 (!%p1368_p8), %vm409_vm3, %v464_v36  ;;  %1507 = vmatprep.subr.msk.bf16.mxu1 (!%p1368_p8), %vm409_vm3, %v465_v37  ;;  %v540_v39 = vsel (!%p1368_p8), %vm409_vm3, %v465_v37, 0  ;;  %v1545_v40 = vld [vmem:[%s1914_s6] sm:$0xff] (!%p1368_p8)   ;;  %vm659_vm8 = vcmask (!%p1368_p8), 261120   ;;  %v1548_v63 = vld [vmem:[%s1915_s7 + $0x8] sm:$0xff] (!%p1368_p8)   ;;  %v1549_v0 = vld [vmem:[%s1915_s7 + $0x10] sm:$0xff] (!%p1368_p8)   ;;  %vm984_vm9 = vcmask (!%p1368_p8), 130112  }
  0x34   : > { %1445 = vmatpush3.bf16.msra.mxu0 (!%p1368_p8), %v488_v38  ;;  %1451 = vmatpush3.bf16.msra.mxu1 (!%p1368_p8), %v540_v39  ;;  %v1547_v42 = vld [vmem:[%s1915_s7] sm:$0xff] (!%p1368_p8)   ;;  %v1550_v1 = vld [vmem:[%s1915_s7 + $0x18] sm:$0xff] (!%p1368_p8)   ;;  %v1552_v3 = vld [vmem:[%s1915_s7 + $0x28] sm:$0xff] (!%p1368_p8)   ;;  %vm991_vm10 = vcmask (!%p1368_p8), 195712   ;;  %vm998_vm11 = vcmask (!%p1368_p8), 261312   ;;  %vm1005_vm12 = vcmask (!%p1368_p8), 326912  }
  0x35   : > { %1446 = vmatprep.mubr.msk.bf16.mxu0 (!%p1368_p8), %vm480_vm7, %v1545_v40  ;;  %1452 = vmatprep.mubr.msk.bf16.mxu1 (!%p1368_p8), %vm480_vm7, %v1545_v40  ;;  %v1551_v2 = vld [vmem:[%s1915_s7 + $0x20] sm:$0xff] (!%p1368_p8)   ;;  %v1553_v4 = vld [vmem:[%s1915_s7 + $0x30] sm:$0xff] (!%p1368_p8)   ;;  %v1554_v5 = vld [vmem:[%s1915_s7 + $0x38] sm:$0xff] (!%p1368_p8)   ;;  %vm1012_vm13 = vcmask (!%p1368_p8), 392512   ;;  %vm1019_vm14 = vcmask (!%p1368_p8), 458112   ;;  %vm1026_vm15 = vcmask (!%p1368_p8), 523712  }
  0x36   : > { %444 = vadd.xlane.f32.xlu1 %v443_v16  ;;  %414 = vadd.xlane.f32.xlu0 %v413_v17  ;;  %vm1033_vm0 = vcmask (!%p1368_p8), 589312   ;;  %vm1040_vm1 = vcmask (!%p1368_p8), 654912   ;;  %vm1047_vm2 = vcmask (!%p1368_p8), 720512   ;;  %vm1054_vm3 = vcmask (!%p1368_p8), 786112  }
  0x37   : > { %1447 = vmatmul.mubr.msk.bf16.vlgmr.msra.gmra.mrb[0].mxu0 (!%p1368_p8), %vm480_vm7, %v1546_v41  ;;  %1453 = vmatmul.mubr.msk.bf16.vlgmr.msra.gmra.mrb[0].mxu1 (!%p1368_p8), %vm480_vm7, %v1546_v41  ;;  %vm1075_vm7 = vcmask (!%p1368_p8), 982912  }
  0x38   : > { %1460 = vmatprep.mubr.msk.bf16.mxu0 (!%p1368_p8), %vm659_vm8, %v1547_v42  ;;  %1480 = vmatprep.mubr.msk.bf16.mxu1 (!%p1368_p8), %vm659_vm8, %v1547_v42 }
  0xbf   : > { %v442_v21 = vpop.xlane.xlu1 %441  ;;  %v412_v22 = vpop.xlane.xlu0 %411 }
  0xc0   : > { %v451_v26 = vrot.slane %v442_v21, %v1727_v23  ;;  %v423_v27 = vrot.slane %v412_v22, %v1727_v23 }
  0xc3   : > { %v445_v24 = vpop.xlane.xlu1 %444  ;;  %v415_v25 = vpop.xlane.xlu0 %414 }
  0xc4   : > { %v455_v29 = vrot.slane %v445_v24, %v1727_v23  ;;  %v427_v31 = vrot.slane %v415_v25, %v1727_v23  ;;  %463 = sbr.rel (%p1368_p8) target bundleno = 703 (0x2bf), region = 135 }
  0xc6   : > { %v456_v32 = vsel %vm428_vm4, %v455_v29, %v451_v26  ;;  %v429_v33 = vsel %vm428_vm4, %v427_v31, %v423_v27 }
  0xc7   : > { %v458_v34 = vadd.f32 %v456_v32, %v434_v28  ;;  %v431_v35 = vadd.f32 %v429_v33, %v404_v30 }
  0xc9   : > { %460 = vst.msk [vmem:[#allocation3] sm:$0x3] %vm459_vm5, %v458_v34  ;;  %vm1061_vm5 = vcmask (!%p1368_p8), 851712  }
  0xca   : > { %433 = vst.msk [vmem:[#allocation2] sm:$0x3] %vm432_vm6, %v431_v35  ;;  %vm1068_vm6 = vcmask (!%p1368_p8), 917312  }
 0x10a   : > { %v1448_v43 = vpop.f32.mrb[0].mxu0  ;;  %v1454_v44 = vpop.f32.mrb[0].mxu1 }
 0x10b   : > { %v524_v45 = vpop.f32.mrb[1].mxu0  ;;  %v576_v46 = vpop.f32.mrb[1].mxu1  ;;  %v593_v49 = vmax.f32 %v1448_v43, 0.0  ;;  %v597_v50 = vmax.f32 %v1454_v44, 0.0 }
 0x10c   : > { %v1449_v47 = vpop.f32.mrb[2].mxu0  ;;  %v1455_v48 = vpop.f32.mrb[2].mxu1  ;;  %v591_v55 = vmax.f32 %v524_v45, 0.0  ;;  %v595_v56 = vmax.f32 %v576_v46, 0.0 }
 0x10d   : > { %v594_v51 = vmax.f32 %v1449_v47, 0.0  ;;  %v598_v52 = vmax.f32 %v1455_v48, 0.0  ;;  %v527_v53 = vpop.f32.mrb[3].mxu0  ;;  %v579_v54 = vpop.f32.mrb[3].mxu1 }
 0x10e   : > { %v592_v57 = vmax.f32 %v527_v53, 0.0  ;;  %v596_v58 = vmax.f32 %v579_v54, 0.0  ;;  %v979_v53 = vadd.s32 4294967288, %v1721_v19 }
 0x10f   : > { %v600_v59 = vpack.c.bf16 %v594_v51, %v593_v49  ;;  %v602_v60 = vpack.c.bf16 %v598_v52, %v597_v50 }
 0x110   : > { %v599_v61 = vpack.c.bf16 %v592_v57, %v591_v55  ;;  %v601_v62 = vpack.c.bf16 %v596_v58, %v595_v56  ;;  %v982_v56 = vsub.s32 %v979_v53, %v1723_v20  ;;  %v986_v57 = vadd.s32 4294967280, %v1721_v19 }
 0x112   : > { %1456 = vmatprep.subr.bf16.mxu0 %v599_v61  ;;  %1476 = vmatprep.subr.bf16.mxu1 %v601_v62 }
 0x113   : > { %1457 = vmatpush3.bf16.msra.mxu0 %v599_v61  ;;  %1477 = vmatpush3.bf16.msra.mxu1 %v601_v62  ;;  %v1000_v61 = vadd.s32 4294967264, %v1721_v19 }
 0x114   : > { %1458 = vmatprep.subr.bf16.mxu0 %v600_v59  ;;  %1478 = vmatprep.subr.bf16.mxu1 %v602_v60 }
 0x117   : > { %1459 = vmatpush3.bf16.msra.mxu0 %v600_v59  ;;  %1479 = vmatpush3.bf16.msra.mxu1 %v602_v60  ;;  %v993_v60 = vadd.s32 4294967272, %v1721_v19 }
 0x11a   : > { %1461 = vmatmul.mubr.msk.bf16.vlgmr.msra.gmra.mrb[4].mxu0 %vm659_vm8, %v1548_v63  ;;  %1481 = vmatmul.mubr.msk.bf16.vlgmr.msra.gmra.mrb[4].mxu1 %vm659_vm8, %v1548_v63 }
 0x11b   : > { %1464 = vmatprep.mubr.msk.bf16.mxu0 %vm659_vm8, %v1549_v0  ;;  %1484 = vmatprep.mubr.msk.bf16.mxu1 %vm659_vm8, %v1549_v0  ;;  %v1007_v0 = vadd.s32 4294967256, %v1721_v19 }
 0x122   : > { %1465 = vmatmul.mubr.msk.bf16.gmra.mrb[8].mxu0 %vm659_vm8, %v1550_v1  ;;  %1485 = vmatmul.mubr.msk.bf16.gmra.mrb[8].mxu1 %vm659_vm8, %v1550_v1  ;;  %v989_v1 = vsub.s32 %v986_v57, %v1723_v20 }
 0x123   : > { %1468 = vmatprep.mubr.msk.bf16.mxu0 %vm659_vm8, %v1551_v2  ;;  %1488 = vmatprep.mubr.msk.bf16.mxu1 %vm659_vm8, %v1551_v2 }
 0x12a   : > { %1469 = vmatmul.mubr.msk.bf16.gmra.mrb[12].mxu0 %vm659_vm8, %v1552_v3  ;;  %1489 = vmatmul.mubr.msk.bf16.gmra.mrb[12].mxu1 %vm659_vm8, %v1552_v3 }
 0x12b   : > { %1472 = vmatprep.mubr.msk.bf16.mxu0 %vm659_vm8, %v1553_v4  ;;  %1492 = vmatprep.mubr.msk.bf16.mxu1 %vm659_vm8, %v1553_v4 }
 0x132   : > { %1473 = vmatmul.mubr.msk.bf16.gmra.mrb[16].mxu0 %vm659_vm8, %v1554_v5  ;;  %1493 = vmatmul.mubr.msk.bf16.gmra.mrb[16].mxu1 %vm659_vm8, %v1554_v5  ;;  %vm1082_vm8 = vcmask 1048512  }
 0x1ed   : > { %v1462_v6 = vpop.f32.mrb[4].mxu0  ;;  %v1482_v7 = vpop.f32.mrb[4].mxu1 }
 0x1ee   : > { %915 = vmax.xlane.f32.xlu1 %v1482_v7  ;;  %v815_v8 = vpop.f32.mrb[5].mxu1  ;;  %883 = vmax.xlane.f32.xlu0 %v1462_v6  ;;  %v718_v9 = vpop.f32.mrb[5].mxu0  ;;  %v996_v6 = vsub.s32 %v993_v60, %v1723_v20  ;;  %v1003_v7 = vsub.s32 %v1000_v61, %v1723_v20 }
 0x1ef   : > { %v1463_v10 = vpop.f32.mrb[6].mxu0  ;;  %v1483_v11 = vpop.f32.mrb[6].mxu1 }
 0x1f0   : > { %v721_v12 = vpop.f32.mrb[7].mxu0  ;;  %v818_v13 = vpop.f32.mrb[7].mxu1 }
 0x1f2   : > { %911 = vmax.xlane.f32.xlu1 %v815_v8  ;;  %879 = vmax.xlane.f32.xlu0 %v718_v9 }
 0x1f5   : > { %v1466_v14 = vpop.f32.mrb[8].mxu0  ;;  %v1486_v15 = vpop.f32.mrb[8].mxu1 }
 0x1f6   : > { %917 = vmax.xlane.f32.xlu1 %v1483_v11  ;;  %885 = vmax.xlane.f32.xlu0 %v1463_v10  ;;  %v734_v16 = vpop.f32.mrb[9].mxu0  ;;  %v831_v17 = vpop.f32.mrb[9].mxu1  ;;  %v1010_v10 = vsub.s32 %v1007_v0, %v1723_v20 }
 0x1f7   : > { %v1467_v18 = vpop.f32.mrb[10].mxu0  ;;  %v1487_v21 = vpop.f32.mrb[10].mxu1 }
 0x1f8   : > { %v834_v22 = vpop.f32.mrb[11].mxu1  ;;  %v737_v24 = vpop.f32.mrb[11].mxu0 }
 0x1fa   : > { %913 = vmax.xlane.f32.xlu1 %v818_v13  ;;  %881 = vmax.xlane.f32.xlu0 %v721_v12  ;;  %v1014_v13 = vadd.s32 4294967248, %v1721_v19 }
 0x1fd   : > { %v1470_v25 = vpop.f32.mrb[12].mxu0  ;;  %v1490_v26 = vpop.f32.mrb[12].mxu1 }
 0x1fe   : > { %923 = vmax.xlane.f32.xlu1 %v1486_v15  ;;  %891 = vmax.xlane.f32.xlu0 %v1466_v14  ;;  %v750_v27 = vpop.f32.mrb[13].mxu0  ;;  %v847_v28 = vpop.f32.mrb[13].mxu1 }
 0x1ff   : > { %v1471_v29 = vpop.f32.mrb[14].mxu0  ;;  %v1491_v30 = vpop.f32.mrb[14].mxu1 }
 0x200   : > { %v850_v31 = vpop.f32.mrb[15].mxu1  ;;  %v753_v32 = vpop.f32.mrb[15].mxu0 }
 0x202   : > { %919 = vmax.xlane.f32.xlu1 %v831_v17  ;;  %887 = vmax.xlane.f32.xlu0 %v734_v16  ;;  %v1021_v16 = vadd.s32 4294967240, %v1721_v19  ;;  %v1035_v17 = vadd.s32 4294967224, %v1721_v19 }
 0x205   : > { %v1474_v33 = vpop.f32.mrb[16].mxu0  ;;  %v1494_v34 = vpop.f32.mrb[16].mxu1 }
 0x206   : > { %925 = vmax.xlane.f32.xlu1 %v1487_v21  ;;  %893 = vmax.xlane.f32.xlu0 %v1467_v18  ;;  %v766_v35 = vpop.f32.mrb[17].mxu0  ;;  %v863_v36 = vpop.f32.mrb[17].mxu1 }
 0x207   : > { %v1475_v37 = vpop.f32.mrb[18].mxu0  ;;  %v1495_v38 = vpop.f32.mrb[18].mxu1 }
 0x208   : > { %v866_v39 = vpop.f32.mrb[19].mxu1  ;;  %v769_v40 = vpop.f32.mrb[19].mxu0 }
 0x20a   : > { %921 = vmax.xlane.f32.xlu1 %v834_v22  ;;  %889 = vmax.xlane.f32.xlu0 %v737_v24 }
 0x20e   : > { %931 = vmax.xlane.f32.xlu1 %v1490_v26  ;;  %899 = vmax.xlane.f32.xlu0 %v1470_v25 }
 0x212   : > { %927 = vmax.xlane.f32.xlu1 %v847_v28  ;;  %895 = vmax.xlane.f32.xlu0 %v750_v27 }
 0x216   : > { %933 = vmax.xlane.f32.xlu1 %v1491_v30  ;;  %901 = vmax.xlane.f32.xlu0 %v1471_v29  ;;  %v1017_v29 = vsub.s32 %v1014_v13, %v1723_v20 }
 0x21a   : > { %929 = vmax.xlane.f32.xlu1 %v850_v31  ;;  %897 = vmax.xlane.f32.xlu0 %v753_v32 }
 0x21e   : > { %939 = vmax.xlane.f32.xlu1 %v1494_v34  ;;  %907 = vmax.xlane.f32.xlu0 %v1474_v33 }
 0x222   : > { %935 = vmax.xlane.f32.xlu1 %v863_v36  ;;  %903 = vmax.xlane.f32.xlu0 %v766_v35  ;;  %v1024_v36 = vsub.s32 %v1021_v16, %v1723_v20 }
 0x226   : > { %937 = vmax.xlane.f32.xlu1 %v866_v39  ;;  %905 = vmax.xlane.f32.xlu0 %v769_v40  ;;  %v1038_v40 = vsub.s32 %v1035_v17, %v1723_v20 }
 0x22a   : > { %941 = vmax.xlane.f32.xlu1 %v1495_v38  ;;  %909 = vmax.xlane.f32.xlu0 %v1475_v37 }
 0x27b   : > { %v916_v41 = vpop.xlane.xlu1 %915  ;;  %v884_v42 = vpop.xlane.xlu0 %883 }
 0x27c   : > { %v1096_v11 = vrot.slane %v916_v41, %v989_v1  ;;  %v990_v12 = vrot.slane %v884_v42, %v989_v1 }
 0x27f   : > { %v912_v43 = vpop.xlane.xlu1 %911  ;;  %v880_v44 = vpop.xlane.xlu0 %879 }
 0x280   : > { %v1087_v4 = vrot.slane %v912_v43, %v1727_v23  ;;  %v978_v5 = vrot.slane %v880_v44, %v1727_v23  ;;  %v1028_v23 = vadd.s32 4294967232, %v1721_v19  ;;  %v1042_v43 = vadd.s32 4294967216, %v1721_v19 }
 0x282   : > { %v1031_v37 = vsub.s32 %v1028_v23, %v1723_v20 }
 0x283   : > { %v918_v45 = vpop.xlane.xlu1 %917  ;;  %v886_v46 = vpop.xlane.xlu0 %885 }
 0x284   : > { %v1101_v25 = vrot.slane %v918_v45, %v996_v6  ;;  %v997_v26 = vrot.slane %v886_v46, %v996_v6  ;;  %v1049_v46 = vadd.s32 4294967208, %v1721_v19 }
 0x287   : > { %v914_v47 = vpop.xlane.xlu1 %913  ;;  %v882_v48 = vpop.xlane.xlu0 %881 }
 0x288   : > { %v1091_v62 = vrot.slane %v914_v47, %v982_v56  ;;  %v983_v63 = vrot.slane %v882_v48, %v982_v56  ;;  %v1056_v47 = vadd.s32 4294967200, %v1721_v19 }
 0x28a   : > { %v1092_v8 = vsel %vm984_vm9, %v1091_v62, %v1087_v4  ;;  %v985_v9 = vsel %vm984_vm9, %v983_v63, %v978_v5  ;;  %v1063_v63 = vadd.s32 4294967192, %v1721_v19 }
 0x28b   : > { %v1793_v49 = vpop.xlane.xlu1 %923  ;;  %v1795_v50 = vpop.xlane.xlu0 %891  ;;  %v1097_v18 = vsel %vm991_vm10, %v1096_v11, %v1092_v8  ;;  %v992_v21 = vsel %vm991_vm10, %v990_v12, %v985_v9  ;;  %v1070_v8 = vadd.s32 4294967184, %v1721_v19  ;;  %v1077_v11 = vadd.s32 4294967176, %v1721_v19 }
 0x28c   : > { %v1102_v32 = vsel %vm998_vm11, %v1101_v25, %v1097_v18  ;;  %v999_v33 = vsel %vm998_vm11, %v997_v26, %v992_v21  ;;  %v1116_v41 = vrot.slane %v1793_v49, %v1017_v29  ;;  %v1018_v42 = vrot.slane %v1795_v50, %v1017_v29 }
 0x28d   : > { %v1066_v12 = vsub.s32 %v1063_v63, %v1723_v20  ;;  %v1080_v21 = vsub.s32 %v1077_v11, %v1723_v20 }
 0x28f   : > { %v920_v51 = vpop.xlane.xlu1 %919  ;;  %v888_v52 = vpop.xlane.xlu0 %887 }
 0x290   : > { %v1106_v22 = vrot.slane %v920_v51, %v1003_v7  ;;  %v1004_v24 = vrot.slane %v888_v52, %v1003_v7 }
 0x292   : > { %v1107_v34 = vsel %vm1005_vm12, %v1106_v22, %v1102_v32  ;;  %v1006_v35 = vsel %vm1005_vm12, %v1004_v24, %v999_v33 }
 0x293   : > { %v1798_v54 = vpop.xlane.xlu1 %925  ;;  %v1800_v55 = vpop.xlane.xlu0 %893 }
 0x294   : > { %v1121_v56 = vrot.slane %v1798_v54, %v1024_v36  ;;  %v1025_v49 = vrot.slane %v1800_v55, %v1024_v36  ;;  %v1059_v54 = vsub.s32 %v1056_v47, %v1723_v20  ;;  %v1052_v55 = vsub.s32 %v1049_v46, %v1723_v20 }
 0x297   : > { %v922_v58 = vpop.xlane.xlu1 %921  ;;  %v890_v59 = vpop.xlane.xlu0 %889 }
 0x298   : > { %v1111_v27 = vrot.slane %v922_v58, %v1010_v10  ;;  %v1011_v28 = vrot.slane %v890_v59, %v1010_v10  ;;  %v1045_v58 = vsub.s32 %v1042_v43, %v1723_v20 }
 0x29a   : > { %v1112_v38 = vsel %vm1012_vm13, %v1111_v27, %v1107_v34  ;;  %v1013_v39 = vsel %vm1012_vm13, %v1011_v28, %v1006_v35 }
 0x29b   : > { %v1808_v2 = vpop.xlane.xlu1 %931  ;;  %v1810_v3 = vpop.xlane.xlu0 %899  ;;  %v1117_v48 = vsel %vm1019_vm14, %v1116_v41, %v1112_v38  ;;  %v1020_v51 = vsel %vm1019_vm14, %v1018_v42, %v1013_v39 }
 0x29c   : > { %v1122_v61 = vsel %vm1026_vm15, %v1121_v56, %v1117_v48  ;;  %v1027_v62 = vsel %vm1026_vm15, %v1025_v49, %v1020_v51  ;;  %v1136_v6 = vrot.slane %v1808_v2, %v1045_v58  ;;  %v1046_v7 = vrot.slane %v1810_v3, %v1045_v58 }
 0x29d   : > { %v1073_v2 = vsub.s32 %v1070_v8, %v1723_v20 }
 0x29f   : > { %v928_v14 = vpop.xlane.xlu1 %927  ;;  %v896_v15 = vpop.xlane.xlu0 %895 }
 0x2a0   : > { %v1126_v52 = vrot.slane %v928_v14, %v1031_v37  ;;  %v1032_v53 = vrot.slane %v896_v15, %v1031_v37  ;;  %v878_v37 = vld [vmem:[#allocation4] sm:$0x3] }
 0x2a2   : > { %v1127_v0 = vsel %vm1033_vm0, %v1126_v52, %v1122_v61  ;;  %v1034_v1 = vsel %vm1033_vm0, %v1032_v53, %v1027_v62 }
 0x2a3   : > { %v1822_v30 = vpop.xlane.xlu1 %933  ;;  %v1824_v31 = vpop.xlane.xlu0 %901 }
 0x2a4   : > { %v1141_v23 = vrot.slane %v1822_v30, %v1052_v55  ;;  %v1053_v17 = vrot.slane %v1824_v31, %v1052_v55 }
 0x2a7   : > { %v930_v44 = vpop.xlane.xlu1 %929  ;;  %v898_v45 = vpop.xlane.xlu0 %897 }
 0x2a8   : > { %v1131_v57 = vrot.slane %v930_v44, %v1038_v40  ;;  %v1039_v50 = vrot.slane %v898_v45, %v1038_v40 }
 0x2aa   : > { %v1132_v4 = vsel %vm1040_vm1, %v1131_v57, %v1127_v0  ;;  %v1041_v5 = vsel %vm1040_vm1, %v1039_v50, %v1034_v1 }
 0x2ab   : > { %v940_v59 = vpop.xlane.xlu1 %939  ;;  %v908_v60 = vpop.xlane.xlu0 %907  ;;  %v1137_v13 = vsel %vm1047_vm2, %v1136_v6, %v1132_v4  ;;  %v1048_v14 = vsel %vm1047_vm2, %v1046_v7, %v1041_v5 }
 0x2ac   : > { %v1142_v19 = vsel %vm1054_vm3, %v1141_v23, %v1137_v13  ;;  %v1055_v22 = vsel %vm1054_vm3, %v1053_v17, %v1048_v14  ;;  %v1156_v30 = vrot.slane %v940_v59, %v1073_v2  ;;  %v1074_v32 = vrot.slane %v908_v60, %v1073_v2 }
 0x2af   : > { %v936_v9 = vpop.xlane.xlu1 %935  ;;  %v904_v10 = vpop.xlane.xlu0 %903 }
 0x2b0   : > { %v1146_v15 = vrot.slane %v936_v9, %v1059_v54  ;;  %v1060_v16 = vrot.slane %v904_v10, %v1059_v54 }
 0x2b2   : > { %v1147_v26 = vsel %vm1061_vm5, %v1146_v15, %v1142_v19  ;;  %v1062_v27 = vsel %vm1061_vm5, %v1060_v16, %v1055_v22 }
 0x2b3   : > { %v938_v3 = vpop.xlane.xlu1 %937  ;;  %v906_v18 = vpop.xlane.xlu0 %905 }
 0x2b4   : > { %v1151_v24 = vrot.slane %v938_v3, %v1066_v12  ;;  %v1067_v25 = vrot.slane %v906_v18, %v1066_v12 }
 0x2b6   : > { %v1152_v28 = vsel %vm1068_vm6, %v1151_v24, %v1147_v26  ;;  %v1069_v29 = vsel %vm1068_vm6, %v1067_v25, %v1062_v27 }
 0x2b7   : > { %v942_v31 = vpop.xlane.xlu1 %941  ;;  %v910_v33 = vpop.xlane.xlu0 %909  ;;  %v1157_v36 = vsel %vm1075_vm7, %v1156_v30, %v1152_v28  ;;  %v1076_v38 = vsel %vm1075_vm7, %v1074_v32, %v1069_v29 }
 0x2b8   : > { %v1161_v34 = vrot.slane %v942_v31, %v1080_v21  ;;  %v1081_v35 = vrot.slane %v910_v33, %v1080_v21 }
 0x2ba   : > { %v1162_v20 = vsel %vm1082_vm8, %v1161_v34, %v1157_v36  ;;  %v1083_v39 = vsel %vm1082_vm8, %v1081_v35, %v1076_v38 }
 0x2bb   : > { %v1163_v40 = vsel %vm428_vm4, %v1162_v20, %v1083_v39 }
 0x2bc   : > { %v1165_v41 = vmax.f32 %v878_v37, %v1163_v40 }
 0x2be   : > { %1166 = vst [vmem:[#allocation4] sm:$0x3] %v1165_v41 }
 0x2bf PF: > { %p1400_p9 = scmp.ne.s32.totalorder %s1680_s30, 1 }
 0x2c0   : > { %v1411_v43 = vld [vmem:[%s1910_s2] sm:$0xff] (!%p1400_p9)   ;;  %vm1177_vm9 = vcmask (!%p1400_p9), 261120   ;;  %s1614_s23 = smov (!%p1400_p9), 4   ;;  %v1615_v47 = vmov (!%p1400_p9), 0.0   ;;  %v1556_v52 = vld [vmem:[%s1911_s3 + $0x8] sm:$0xff] (!%p1400_p9)   ;;  %vm1241_vm10 = vcmask (!%p1400_p9), 1044480  }
 0x2c1   : > { %1170 = sbr.rel (%p1400_p9) target bundleno = 1056 (0x420), region = 139  ;;  %v1412_v44 = vunpack.c.l.bf16 (!%p1400_p9), %v1411_v43  ;;  %v1413_v45 = vunpack.c.h.bf16 (!%p1400_p9), %v1411_v43  ;;  %v1555_v46 = vld [vmem:[%s1911_s3] sm:$0xff] (!%p1400_p9)   ;;  %1496 = vmatprep.subr.bf16.mxu0 (!%p1400_p9), %v1615_v47  ;;  %v1557_v49 = vld [vmem:[%s1911_s3 + $0x10] sm:$0x1f] (!%p1400_p9)   ;;  %vm1616_vm11 = vmmov (!%p1400_p9), 0   ;;  %s1617_s14 = smov (!%p1400_p9), 10  }
 0x2c2   : > { %1497 = vmatpush3.bf16.msra.mxu0 (!%p1400_p9), %v1555_v46  ;;  %1502 = vmatprep.mubr.msk.bf16.mxu0 (!%p1400_p9), %vm1616_vm11, %v1615_v47  ;;  %v1243_v60 = vsel (!%p1400_p9), %vm1241_vm10, %v1557_v49, 0  ;;  %vm1202_vm12 = vcmask (!%p1400_p9), 31744   ;;  %vm1204_vm13 = vcmask (!%p1400_p9), 80896   ;;  %vm1237_vm14 = vcmask (!%p1400_p9), 343040   ;;  %v1401_v10 = vld [vmem:[%s1912_s4] ss:$0 sm:$0xff] (!%p1400_p9) }
 0x2c3   : > { %v1178_v48 = vsel (!%p1400_p9), %vm1177_vm9, %v1412_v44, 0.0  ;;  %v1185_v51 = vsel (!%p1400_p9), %vm1177_vm9, %v1413_v45, 0.0  ;;  %1498 = vmatprep.subr.bf16.mxu0 (!%p1400_p9), %v1615_v47 }
 0x2c4   : > { %v1172_v42 = vld [vmem:[#allocation3] sm:$0x3] (!%p1400_p9)  ;;  %v1179_v53 = vrot.slane (!%p1400_p9), %v1178_v48, 4  ;;  %v1186_v56 = vrot.slane (!%p1400_p9), %v1185_v51, 4 }
 0x2c5   : > { %1193 = vrot.lane.b32.xlu0 (!%p1400_p9), %v1172_v42, %s1614_s23  ;;  %v1171_v5 = vld [vmem:[#allocation2] sm:$0x3] (!%p1400_p9)  ;;  %v1285_v12 = vld [vmem:[#allocation4] sm:$0x3] (!%p1400_p9) }
 0x2c6   : > { %v1180_v57 = vadd.f32 (!%p1400_p9), %v1179_v53, %v1178_v48  ;;  %v1187_v50 = vadd.f32 (!%p1400_p9), %v1186_v56, %v1185_v51  ;;  %1499 = vmatpush3.bf16.msra.mxu0 (!%p1400_p9), %v1556_v52 }
 0x2c7   : > { %1500 = vmatprep.subr.bf16.mxu0 (!%p1400_p9), %v1615_v47 }
 0x2c8   : > { %v1181_v58 = vrot.slane %v1180_v57, 2  ;;  %v1188_v59 = vrot.slane %v1187_v50, 2 }
 0x2ca   : > { %v1182_v61 = vadd.f32 %v1181_v58, %v1180_v57  ;;  %v1189_v62 = vadd.f32 %v1188_v59, %v1187_v50  ;;  %1501 = vmatpush3.bf16.msra.mxu0 %v1243_v60 }
 0x2cc   : > { %v1183_v63 = vrot.slane %v1182_v61, 1  ;;  %v1190_v0 = vrot.slane %v1189_v62, 1 }
 0x2ce   : > { %v1184_v1 = vadd.f32 %v1183_v63, %v1182_v61  ;;  %v1191_v54 = vadd.f32 %v1190_v0, %v1189_v62 }
 0x2d0   : > { %v1198_v55 = vsel %vm428_vm4, %v1191_v54, %v1184_v1 }
 0x2d1   : > { %1199 = vrot.lane.b32.xlu0 %v1198_v55, %s1617_s14 }
 0x337   : > { %v1194_v4 = vpop.permute.xlu0 %1193 }
 0x338   : > { %v1203_v6 = vsel %vm1202_vm12, %v1171_v5, %v1194_v4 }
 0x343   : > { %v1200_v7 = vpop.permute.xlu0 %1199 }
 0x344   : > { %v1205_v8 = vsel %vm1204_vm13, %v1203_v6, %v1200_v7 }
 0x345   : > { %v1206_v9 = vpack.c.bf16 %v1205_v8, %v1205_v8 }
 0x347   : > { %1503 = vmatmul.mubr.msk.bf16.vlgmr.msra.gmra.mrb[0].mxu0 %vm1237_vm14, %v1206_v9 }
 0x41a   : > { %v1279_v11 = vpop.f32.mrb[0].mxu0 }
 0x41b   : > { %v1280_v13 = vadd.f32 %v1401_v10, %v1279_v11  ;;  %v1504_v14 = vpop.f32.mrb[1].mxu0 }
 0x41c   : > { %v1282_v15 = vpop.f32.mrb[2].mxu0 }
 0x41d   : > { %v1286_v16 = vadd.f32 %v1285_v12, %v1280_v13  ;;  %v1505_v23 = vpop.f32.mrb[3].mxu0 }
 0x41f   : > { %1287 = vst [vmem:[#allocation7] sm:$0x3] %v1286_v16 }
 0x420 PF: > { %p1512_p10 = scmp.eq.s32.totalorder %s1680_s30, 1  ;;  %s1618_s27 = smov [#allocation7]  }
 0x421   : > { %s1295_s29 = sshll.u32 %s1618_s27, 4  ;;  %s1296_s29 = int_to_ptr.vmem [resolvable:$true] %s1295_s29 }
 0x422   : > { %s1558_s17 = scalar_lea.vmem %s1296_s29, 32  ;;  %p1565_p0 = scmp.lt.s32.totalorder %s1296_s29, %s1296_s29 }
 0x423   : > { %p1559_p11 = scmp.ne.s32.totalorder %s1296_s29, %s1558_s17  ;;  %p1566_p1 = scmp.lt.s32.totalorder %s1558_s17, %s1558_s17 }
 0x425   : > { %p1560_p12 = pnand %p1559_p11, %p1512_p10  ;;  %p1567_p2 = por %p1566_p1, %p1565_p0 }
 0x427   : > { %p1561_p13 = pneg %p1560_p12 }
 0x429   : > { %p1568_p3 = pnand %p1567_p2, %p1561_p13 }
 0x42b   : > { %1571 = shalt.err (!%p1568_p3)
}
 0x42c   : > { %s1572_s20 = scalar_lea.hbm %s1916_s8, 32 }
 0x42d   : > { %p1573_p4 = scmp.ne.s32.totalorder %s1916_s8, %s1572_s20  ;;  %p1578_p7 = scmp.lt.u32.totalorder %s1572_s20, %s1916_s8 }
 0x42f   : > { %p1574_p5 = pnand %p1573_p4, %p1512_p10 }
 0x431   : > { %p1575_p6 = pneg %p1574_p5 }
 0x433   : > { %p1580_p8 = pnand %p1578_p7, %p1575_p6 }
 0x435   : > { %1583 = shalt.err (!%p1580_p8)
}
 0x436   : > { %1509 = dma.vmem_to_hbm [thread:$0]  (%p1512_p10), %s1296_s29, 32, %s1916_s8, [#allocation8]  }
 0x437   : > { %1597 = dma.done.wait (%p1512_p10), [#allocation8], 32  }
 0x438   : > { %1599 = vsyncadd (%p1512_p10), [#allocation8], 4294967264 }
 0x439 PF: > { %p16_p9 = scmp.ge.s32.totalorder %s1683_s9, 4   ;;  %s1918_s27 = smov %s1606_s28 }
 0x43a   : > { %s1919_s28 = smov %s1692_s12  ;;  %s1920_s29 = smov %s1683_s9 }
 0x43b   :  { %18 = sbr.rel (!%p16_p9) target bundleno = 2 (0x2), region = 179 }
 0x442   :  { %1308 = vsyncpa [#allocation8], 1 }
 0x443   :  { %1310 = vsyncpa [#allocation8 + $0x1], 1 }

</bundles_post_ra>
